<compile_context>
chip_gen: v5e
topology: v5e:2x2
jax: 0.10.0
libtpu: 0.0.40
codegen_flags: <defaults>
</compile_context>

<pallas_src>
import functools

import jax
import jax.numpy as jnp
from jax.experimental import pallas as pl
from jax.experimental.pallas import tpu as pltpu


def _srb_kernel(*refs, K, P, W, HW, has_resample):
    """One batch element per grid step, (C, H*W) layout (spatial on lanes).

    x_ref   : (1, Cin, HW)        flattened NCHW input slab
    w1_ref  : (Cmid, K*Cin)       conv1 taps fused along the contraction
    s1/b1   : (Cmid, 1)           folded BN1 scale / (conv bias + BN) bias
    w2_ref  : (Cout, K*Cmid)
    s2/b2   : (Cout, 1)
    wr/br   : (Cout, Cin),(Cout,1) resample 1x1 conv+BN folded (only if present)
    o_ref   : (1, Cout, HW)
    xpad_ref: (Cin,  (H+2P)*W)    VMEM scratch, H-padded input
    fpad_ref: (Cmid, (H+2P)*W)    VMEM scratch, H-padded conv1 activations
    """
    if has_resample:
        (x_ref, w1_ref, s1_ref, b1_ref, w2_ref, s2_ref, b2_ref,
         wr_ref, br_ref, o_ref, xpad_ref, fpad_ref) = refs
    else:
        (x_ref, w1_ref, s1_ref, b1_ref, w2_ref, s2_ref, b2_ref,
         o_ref, xpad_ref, fpad_ref) = refs
        wr_ref = br_ref = None

    halo = P * W

    # Zero only the halo lane-columns (P*W lanes each side), not the whole
    # scratch; the interior is fully overwritten below.  Done every step
    # (cheap) rather than only at program_id == 0 so grid steps stay fully
    # independent and safe under "parallel" core sharding.
    if P > 0:
        xpad_ref[:, :halo] = jnp.zeros((xpad_ref.shape[0], halo),
                                       xpad_ref.dtype)
        xpad_ref[:, halo + HW:] = jnp.zeros((xpad_ref.shape[0], halo),
                                            xpad_ref.dtype)
        fpad_ref[:, :halo] = jnp.zeros((fpad_ref.shape[0], halo),
                                       fpad_ref.dtype)
        fpad_ref[:, halo + HW:] = jnp.zeros((fpad_ref.shape[0], halo),
                                            fpad_ref.dtype)

    x = x_ref[0]                                   # (Cin, HW), lane-dense
    xpad_ref[:, halo:halo + HW] = x

    # ---- conv1: one MXU matmul, contraction depth K*Cin -------------------
    cols1 = jnp.concatenate(
        [xpad_ref[:, k * W:k * W + HW] for k in range(K)], axis=0)
    f = jnp.dot(w1_ref[...], cols1, preferred_element_type=jnp.float32)
    f = jnp.maximum(f * s1_ref[...] + b1_ref[...], 0.0)      # folded BN1+ReLU
    fpad_ref[:, halo:halo + HW] = f.astype(fpad_ref.dtype)

    # ---- conv2: one MXU matmul, contraction depth K*Cmid -------------------
    cols2 = jnp.concatenate(
        [fpad_ref[:, k * W:k * W + HW] for k in range(K)], axis=0)
    feat = jnp.dot(w2_ref[...], cols2, preferred_element_type=jnp.float32)
    feat = jnp.maximum(feat * s2_ref[...] + b2_ref[...], 0.0)  # folded BN2+ReLU

    # ---- identity / resample path ------------------------------------------
    if has_resample:
        identity = jnp.dot(wr_ref[...], x,
                           preferred_element_type=jnp.float32) + br_ref[...]
    else:
        identity = x       # no matmul, no eye(Cin) weight DMA

    o_ref[0] = jnp.maximum(feat + identity, 0.0).astype(o_ref.dtype)


def spatial_residual_block(x, params, kernel_size=7, padding=3, eps=1e-5,
                           compute_dtype=jnp.float32):
    """x: (N, Cin, H, W) float32 (PyTorch NCHW). Returns (N, Cout, H, W) f32.

    compute_dtype: dtype of the MXU operands (input slab + folded weights).
    Use jnp.bfloat16 on v6e/v7x for 2x MXU rate and half the DMA/VMEM bytes;
    accumulation and the BN/ReLU epilogue stay float32 either way.
    """
    N, Cin, H, W = x.shape
    K, P = kernel_size, padding
    HW = H * W
    HpW = (H + 2 * P) * W

    def fold_conv_bn(w, b, g, be, rm, rv):
        # w: torch OIHW (Co, Ci, K, 1) -> fused (Co, K*Ci), contraction index
        # ordered k*Ci + ci to match the in-kernel im2col concatenation.
        co = w.shape[0]
        scale = (g / jnp.sqrt(rv + eps)).astype(jnp.float32)
        wf = jnp.transpose(w[..., 0], (0, 2, 1)).reshape(co, -1)
        bias = b * scale + (be - rm * scale)
        return (wf.astype(compute_dtype), scale[:, None],
                bias[:, None].astype(jnp.float32))

    w1f, s1, b1 = fold_conv_bn(params['w1'], params['b1'], params['g1'],
                               params['be1'], params['rm1'], params['rv1'])
    w2f, s2, b2 = fold_conv_bn(params['w2'], params['b2'], params['g2'],
                               params['be2'], params['rm2'], params['rv2'])
    Cmid, Cout = w1f.shape[0], w2f.shape[0]

    has_resample = 'wr' in params

    # NCHW -> (N, Cin, H*W): a pure reshape — no transpose, no HBM pad copy.
    args = [x.reshape(N, Cin, HW).astype(compute_dtype),
            w1f, s1, b1, w2f, s2, b2]
    in_specs = [
        pl.BlockSpec((1, Cin, HW), lambda n: (n, 0, 0)),
        pl.BlockSpec((Cmid, K * Cin), lambda n: (0, 0)),
        pl.BlockSpec((Cmid, 1), lambda n: (0, 0)),
        pl.BlockSpec((Cmid, 1), lambda n: (0, 0)),
        pl.BlockSpec((Cout, K * Cmid), lambda n: (0, 0)),
        pl.BlockSpec((Cout, 1), lambda n: (0, 0)),
        pl.BlockSpec((Cout, 1), lambda n: (0, 0)),
    ]
    if has_resample:   # 1x1 conv + BN fully folded into (Cout, Cin) + bias
        sr = params['gr'] / jnp.sqrt(params['rvr'] + eps)
        wr = (params['wr'][:, :, 0, 0] * sr[:, None]).astype(compute_dtype)
        br = ((params['br'] - params['rmr']) * sr
              + params['ber'])[:, None].astype(jnp.float32)
        args += [wr, br]
        in_specs += [pl.BlockSpec((Cout, Cin), lambda n: (0, 0)),
                     pl.BlockSpec((Cout, 1), lambda n: (0, 0))]

    kernel = functools.partial(_srb_kernel, K=K, P=P, W=W, HW=HW,
                               has_resample=has_resample)
    out = pl.pallas_call(
        kernel,
        out_shape=jax.ShapeDtypeStruct((N, Cout, HW), jnp.float32),
        grid_spec=pltpu.PrefetchScalarGridSpec(
            num_scalar_prefetch=0,
            grid=(N,),
            in_specs=in_specs,
            out_specs=pl.BlockSpec((1, Cout, HW), lambda n: (n, 0, 0)),
            scratch_shapes=[pltpu.VMEM((Cin, HpW), compute_dtype),
                            pltpu.VMEM((Cmid, HpW), compute_dtype)],
        ),
        compiler_params=pltpu.CompilerParams(
            dimension_semantics=("parallel",)),
    )(*args)

    return out.reshape(N, Cout, H, W)      # no output transpose either


def reference_forward(x, params, kernel_size=7, padding=3, eps=1e-5):
    """Pure-JAX reference (lax conv), inference-mode BN, incl. resample path."""
    P = padding

    def conv(y, w, b, pad):
        out = jax.lax.conv_general_dilated(
            y, w, window_strides=(1, 1), padding=pad,
            dimension_numbers=('NCHW', 'OIHW', 'NCHW'))
        return out + b[None, :, None, None]

    def bn(y, g, be, rm, rv):
        s = g / jnp.sqrt(rv + eps)
        return (y - rm[None, :, None, None]) * s[None, :, None, None] \
            + be[None, :, None, None]

    if 'wr' in params:
        identity = bn(conv(x, params['wr'], params['br'], ((0, 0), (0, 0))),
                      params['gr'], params['ber'], params['rmr'], params['rvr'])
    else:
        identity = x
    f = jax.nn.relu(bn(conv(x, params['w1'], params['b1'], ((P, P), (0, 0))),
                       params['g1'], params['be1'], params['rm1'], params['rv1']))
    f = jax.nn.relu(bn(conv(f, params['w2'], params['b2'], ((P, P), (0, 0))),
                       params['g2'], params['be2'], params['rm2'], params['rv2']))
    return jax.nn.relu(f + identity)


if __name__ == "__main__":
    K, P = 7, 3
    N, H, W = 2, 16, 16
    key = jax.random.PRNGKey(0)

    def conv_bn_params(k, ci, co, kh, kw=1):
        ks = jax.random.split(k, 6)
        return (jax.random.normal(ks[0], (co, ci, kh, kw), jnp.float32) * 0.2,
                jax.random.normal(ks[1], (co,), jnp.float32) * 0.1,
                jax.random.uniform(ks[2], (co,), jnp.float32, 0.5, 1.5),
                jax.random.normal(ks[3], (co,), jnp.float32) * 0.1,
                jax.random.normal(ks[4], (co,), jnp.float32) * 0.1,
                jax.random.uniform(ks[5], (co,), jnp.float32, 0.5, 1.5))

    # ---- case 1: in_channels == out_channels (identity shortcut) ----------
    k1, k2, k3, key = jax.random.split(key, 4)
    C = 4
    w1, b1, g1, be1, rm1, rv1 = conv_bn_params(k1, C, C, K)
    w2, b2, g2, be2, rm2, rv2 = conv_bn_params(k2, C, C, K)
    params = dict(w1=w1, b1=b1, g1=g1, be1=be1, rm1=rm1, rv1=rv1,
                  w2=w2, b2=b2, g2=g2, be2=be2, rm2=rm2, rv2=rv2)
    x = jax.random.normal(k3, (N, C, H, W), jnp.float32)

    out = jax.block_until_ready(spatial_residual_block(x, params, K, P))
    ref = reference_forward(x, params, K, P)
    assert out.shape == (N, C, H, W)
    assert jnp.max(jnp.abs(out - ref)) < 1e-4, "mismatch (identity path)"

    # ---- case 2: in_channels != out_channels (resample 1x1 conv + BN) -----
    k1, k2, k3, k4, key = jax.random.split(key, 5)
    Cin, Cmid, Cout = 4, 8, 8
    w1, b1, g1, be1, rm1, rv1 = conv_bn_params(k1, Cin, Cmid, K)
    w2, b2, g2, be2, rm2, rv2 = conv_bn_params(k2, Cmid, Cout, K)
    wr, br, gr, ber, rmr, rvr = conv_bn_params(k3, Cin, Cout, 1)
    params_r = dict(w1=w1, b1=b1, g1=g1, be1=be1, rm1=rm1, rv1=rv1,
                    w2=w2, b2=b2, g2=g2, be2=be2, rm2=rm2, rv2=rv2,
                    wr=wr, br=br, gr=gr, ber=ber, rmr=rmr, rvr=rvr)
    x2 = jax.random.normal(k4, (N, Cin, H, W), jnp.float32)

    out2 = jax.block_until_ready(spatial_residual_block(x2, params_r, K, P))
    ref2 = reference_forward(x2, params_r, K, P)
    assert out2.shape == (N, Cout, H, W)
    assert jnp.max(jnp.abs(out2 - ref2)) < 1e-4, "mismatch (resample path)"

    print("KERNEL_OK")
</pallas_src>

<mosaic_0001>
module attributes {stable_mosaic.version = 11 : i64} {
  func.func @_srb_kernel(%arg0: i32, %arg1: memref<1x4x256xf32, #tpu.memory_space<vmem>>, %arg2: memref<4x28xf32, #tpu.memory_space<vmem>>, %arg3: memref<4x1xf32, #tpu.memory_space<vmem>>, %arg4: memref<4x1xf32, #tpu.memory_space<vmem>>, %arg5: memref<4x28xf32, #tpu.memory_space<vmem>>, %arg6: memref<4x1xf32, #tpu.memory_space<vmem>>, %arg7: memref<4x1xf32, #tpu.memory_space<vmem>>, %arg8: memref<1x4x256xf32, #tpu.memory_space<vmem>>, %arg9: memref<4x352xf32, #tpu.memory_space<vmem>>, %arg10: memref<4x352xf32, #tpu.memory_space<vmem>>) attributes {dimension_semantics = [#tpu.dimension_semantics<parallel>], iteration_bounds = array<i64: 2>, scalar_prefetch = 0 : i64, scratch_operands = 2 : i64, tpu.core_type = #tpu.core_type<tc>, window_params = [{transform_indices = @transform_0, window_bounds = array<i64: 1, 4, 256>}, {pipeline_mode = #tpu.pipeline_mode<synchronous>, transform_indices = @transform_1, window_bounds = array<i64: 4, 28>}, {pipeline_mode = #tpu.pipeline_mode<synchronous>, transform_indices = @transform_2, window_bounds = array<i64: 4, 1>}, {pipeline_mode = #tpu.pipeline_mode<synchronous>, transform_indices = @transform_3, window_bounds = array<i64: 4, 1>}, {pipeline_mode = #tpu.pipeline_mode<synchronous>, transform_indices = @transform_4, window_bounds = array<i64: 4, 28>}, {pipeline_mode = #tpu.pipeline_mode<synchronous>, transform_indices = @transform_5, window_bounds = array<i64: 4, 1>}, {pipeline_mode = #tpu.pipeline_mode<synchronous>, transform_indices = @transform_6, window_bounds = array<i64: 4, 1>}, {transform_indices = @transform_7, window_bounds = array<i64: 1, 4, 256>}]} {
    %cst = arith.constant 0.000000e+00 : f32
    %0 = vector.broadcast %cst : f32 to vector<4x48xf32>
    %c0 = arith.constant 0 : index
    %c0_0 = arith.constant 0 : index
    %1 = vector.load %arg9[%c0, %c0_0] : memref<4x352xf32, #tpu.memory_space<vmem>>, vector<4x48xf32>
    tpu.vector_store %arg9[%c0, %c0_0], %0 {strides = array<i32>} : memref<4x352xf32, #tpu.memory_space<vmem>>, vector<4x48xf32>,
    %cst_1 = arith.constant 0.000000e+00 : f32
    %2 = vector.broadcast %cst_1 : f32 to vector<4x48xf32>
    %c0_2 = arith.constant 0 : index
    %c304 = arith.constant 304 : index
    %3 = vector.load %arg9[%c0_2, %c304] : memref<4x352xf32, #tpu.memory_space<vmem>>, vector<4x48xf32>
    tpu.vector_store %arg9[%c0_2, %c304], %2 {strides = array<i32>} : memref<4x352xf32, #tpu.memory_space<vmem>>, vector<4x48xf32>,
    %cst_3 = arith.constant 0.000000e+00 : f32
    %4 = vector.broadcast %cst_3 : f32 to vector<4x48xf32>
    %c0_4 = arith.constant 0 : index
    %c0_5 = arith.constant 0 : index
    %5 = vector.load %arg10[%c0_4, %c0_5] : memref<4x352xf32, #tpu.memory_space<vmem>>, vector<4x48xf32>
    tpu.vector_store %arg10[%c0_4, %c0_5], %4 {strides = array<i32>} : memref<4x352xf32, #tpu.memory_space<vmem>>, vector<4x48xf32>,
    %cst_6 = arith.constant 0.000000e+00 : f32
    %6 = vector.broadcast %cst_6 : f32 to vector<4x48xf32>
    %c0_7 = arith.constant 0 : index
    %c304_8 = arith.constant 304 : index
    %7 = vector.load %arg10[%c0_7, %c304_8] : memref<4x352xf32, #tpu.memory_space<vmem>>, vector<4x48xf32>
    tpu.vector_store %arg10[%c0_7, %c304_8], %6 {strides = array<i32>} : memref<4x352xf32, #tpu.memory_space<vmem>>, vector<4x48xf32>,
    %c0_9 = arith.constant 0 : index
    %c0_10 = arith.constant 0 : index
    %c0_11 = arith.constant 0 : index
    %8 = vector.load %arg1[%c0_9, %c0_10, %c0_11] : memref<1x4x256xf32, #tpu.memory_space<vmem>>, vector<1x4x256xf32>
    %9 = vector.shape_cast %8 : vector<1x4x256xf32> to vector<4x256xf32>
    %c0_12 = arith.constant 0 : index
    %c48 = arith.constant 48 : index
    %10 = vector.load %arg9[%c0_12, %c48] : memref<4x352xf32, #tpu.memory_space<vmem>>, vector<4x256xf32>
    tpu.vector_store %arg9[%c0_12, %c48], %9 {strides = array<i32>} : memref<4x352xf32, #tpu.memory_space<vmem>>, vector<4x256xf32>,
    %c0_13 = arith.constant 0 : index
    %c0_14 = arith.constant 0 : index
    %11 = vector.load %arg9[%c0_13, %c0_14] : memref<4x352xf32, #tpu.memory_space<vmem>>, vector<4x256xf32>
    %c0_15 = arith.constant 0 : index
    %c16 = arith.constant 16 : index
    %12 = vector.load %arg9[%c0_15, %c16] : memref<4x352xf32, #tpu.memory_space<vmem>>, vector<4x256xf32>
    %c0_16 = arith.constant 0 : index
    %c32 = arith.constant 32 : index
    %13 = vector.load %arg9[%c0_16, %c32] : memref<4x352xf32, #tpu.memory_space<vmem>>, vector<4x256xf32>
    %c0_17 = arith.constant 0 : index
    %c48_18 = arith.constant 48 : index
    %14 = vector.load %arg9[%c0_17, %c48_18] : memref<4x352xf32, #tpu.memory_space<vmem>>, vector<4x256xf32>
    %c0_19 = arith.constant 0 : index
    %c64 = arith.constant 64 : index
    %15 = vector.load %arg9[%c0_19, %c64] : memref<4x352xf32, #tpu.memory_space<vmem>>, vector<4x256xf32>
    %c0_20 = arith.constant 0 : index
    %c80 = arith.constant 80 : index
    %16 = vector.load %arg9[%c0_20, %c80] : memref<4x352xf32, #tpu.memory_space<vmem>>, vector<4x256xf32>
    %c0_21 = arith.constant 0 : index
    %c96 = arith.constant 96 : index
    %17 = vector.load %arg9[%c0_21, %c96] : memref<4x352xf32, #tpu.memory_space<vmem>>, vector<4x256xf32>
    %18 = tpu.concatenate %11, %12, %13, %14, %15, %16, %17 in 0 : vector<4x256xf32>, vector<4x256xf32>, vector<4x256xf32>, vector<4x256xf32>, vector<4x256xf32>, vector<4x256xf32>, vector<4x256xf32> -> vector<28x256xf32>
    %c0_22 = arith.constant 0 : index
    %c0_23 = arith.constant 0 : index
    %19 = vector.load %arg2[%c0_22, %c0_23] : memref<4x28xf32, #tpu.memory_space<vmem>>, vector<4x28xf32>
    %cst_24 = arith.constant dense<0.000000e+00> : vector<4x256xf32>
    %20 = tpu.matmul %19, %18, %cst_24 {dimension_numbers = #tpu.dot_dimension_numbers<[1], [0], [0], [1], [0, 0, 1, 1], [], []>} : vector<4x28xf32>, vector<28x256xf32>, vector<4x256xf32> -> vector<4x256xf32>
    %c0_25 = arith.constant 0 : index
    %c0_26 = arith.constant 0 : index
    %21 = vector.load %arg3[%c0_25, %c0_26] : memref<4x1xf32, #tpu.memory_space<vmem>>, vector<4x1xf32>
    %22 = vector.broadcast %21 : vector<4x1xf32> to vector<4x256xf32>
    %23 = arith.mulf %20, %22 : vector<4x256xf32>
    %c0_27 = arith.constant 0 : index
    %c0_28 = arith.constant 0 : index
    %24 = vector.load %arg4[%c0_27, %c0_28] : memref<4x1xf32, #tpu.memory_space<vmem>>, vector<4x1xf32>
    %25 = vector.broadcast %24 : vector<4x1xf32> to vector<4x256xf32>
    %26 = arith.addf %23, %25 : vector<4x256xf32>
    %cst_29 = arith.constant 0.000000e+00 : f32
    %27 = vector.broadcast %cst_29 : f32 to vector<4x256xf32>
    %28 = arith.maximumf %26, %27 : vector<4x256xf32>
    %c0_30 = arith.constant 0 : index
    %c48_31 = arith.constant 48 : index
    %29 = vector.load %arg10[%c0_30, %c48_31] : memref<4x352xf32, #tpu.memory_space<vmem>>, vector<4x256xf32>
    tpu.vector_store %arg10[%c0_30, %c48_31], %28 {strides = array<i32>} : memref<4x352xf32, #tpu.memory_space<vmem>>, vector<4x256xf32>,
    %c0_32 = arith.constant 0 : index
    %c0_33 = arith.constant 0 : index
    %30 = vector.load %arg10[%c0_32, %c0_33] : memref<4x352xf32, #tpu.memory_space<vmem>>, vector<4x256xf32>
    %c0_34 = arith.constant 0 : index
    %c16_35 = arith.constant 16 : index
    %31 = vector.load %arg10[%c0_34, %c16_35] : memref<4x352xf32, #tpu.memory_space<vmem>>, vector<4x256xf32>
    %c0_36 = arith.constant 0 : index
    %c32_37 = arith.constant 32 : index
    %32 = vector.load %arg10[%c0_36, %c32_37] : memref<4x352xf32, #tpu.memory_space<vmem>>, vector<4x256xf32>
    %c0_38 = arith.constant 0 : index
    %c48_39 = arith.constant 48 : index
    %33 = vector.load %arg10[%c0_38, %c48_39] : memref<4x352xf32, #tpu.memory_space<vmem>>, vector<4x256xf32>
    %c0_40 = arith.constant 0 : index
    %c64_41 = arith.constant 64 : index
    %34 = vector.load %arg10[%c0_40, %c64_41] : memref<4x352xf32, #tpu.memory_space<vmem>>, vector<4x256xf32>
    %c0_42 = arith.constant 0 : index
    %c80_43 = arith.constant 80 : index
    %35 = vector.load %arg10[%c0_42, %c80_43] : memref<4x352xf32, #tpu.memory_space<vmem>>, vector<4x256xf32>
    %c0_44 = arith.constant 0 : index
    %c96_45 = arith.constant 96 : index
    %36 = vector.load %arg10[%c0_44, %c96_45] : memref<4x352xf32, #tpu.memory_space<vmem>>, vector<4x256xf32>
    %37 = tpu.concatenate %30, %31, %32, %33, %34, %35, %36 in 0 : vector<4x256xf32>, vector<4x256xf32>, vector<4x256xf32>, vector<4x256xf32>, vector<4x256xf32>, vector<4x256xf32>, vector<4x256xf32> -> vector<28x256xf32>
    %c0_46 = arith.constant 0 : index
    %c0_47 = arith.constant 0 : index
    %38 = vector.load %arg5[%c0_46, %c0_47] : memref<4x28xf32, #tpu.memory_space<vmem>>, vector<4x28xf32>
    %cst_48 = arith.constant dense<0.000000e+00> : vector<4x256xf32>
    %39 = tpu.matmul %38, %37, %cst_48 {dimension_numbers = #tpu.dot_dimension_numbers<[1], [0], [0], [1], [0, 0, 1, 1], [], []>} : vector<4x28xf32>, vector<28x256xf32>, vector<4x256xf32> -> vector<4x256xf32>
    %c0_49 = arith.constant 0 : index
    %c0_50 = arith.constant 0 : index
    %40 = vector.load %arg6[%c0_49, %c0_50] : memref<4x1xf32, #tpu.memory_space<vmem>>, vector<4x1xf32>
    %41 = vector.broadcast %40 : vector<4x1xf32> to vector<4x256xf32>
    %42 = arith.mulf %39, %41 : vector<4x256xf32>
    %c0_51 = arith.constant 0 : index
    %c0_52 = arith.constant 0 : index
    %43 = vector.load %arg7[%c0_51, %c0_52] : memref<4x1xf32, #tpu.memory_space<vmem>>, vector<4x1xf32>
    %44 = vector.broadcast %43 : vector<4x1xf32> to vector<4x256xf32>
    %45 = arith.addf %42, %44 : vector<4x256xf32>
    %cst_53 = arith.constant 0.000000e+00 : f32
    %46 = vector.broadcast %cst_53 : f32 to vector<4x256xf32>
    %47 = arith.maximumf %45, %46 : vector<4x256xf32>
    %48 = arith.addf %47, %9 : vector<4x256xf32>
    %cst_54 = arith.constant 0.000000e+00 : f32
    %49 = vector.broadcast %cst_54 : f32 to vector<4x256xf32>
    %50 = arith.maximumf %48, %49 : vector<4x256xf32>
    %c0_55 = arith.constant 0 : index
    %c0_56 = arith.constant 0 : index
    %c0_57 = arith.constant 0 : index
    %51 = vector.load %arg8[%c0_55, %c0_56, %c0_57] : memref<1x4x256xf32, #tpu.memory_space<vmem>>, vector<1x4x256xf32>
    %52 = vector.shape_cast %51 : vector<1x4x256xf32> to vector<4x256xf32>
    %53 = vector.shape_cast %50 : vector<4x256xf32> to vector<1x4x256xf32>
    tpu.vector_store %arg8[%c0_55, %c0_56, %c0_57], %53 {strides = array<i32>} : memref<1x4x256xf32, #tpu.memory_space<vmem>>, vector<1x4x256xf32>,
    return
  }
  func.func @transform_0(%arg0: i32) -> (i32, i32, i32) {
    %c0_i32 = arith.constant 0 : i32
    %c0_i32_0 = arith.constant 0 : i32
    %c0_i32_1 = arith.constant 0 : i32
    return %arg0, %c0_i32, %c0_i32_0 : i32, i32, i32
  }
  func.func @transform_1(%arg0: i32) -> (i32, i32) {
    %c0_i32 = arith.constant 0 : i32
    %c0_i32_0 = arith.constant 0 : i32
    %c0_i32_1 = arith.constant 0 : i32
    return %c0_i32, %c0_i32_0 : i32, i32
  }
  func.func @transform_2(%arg0: i32) -> (i32, i32) {
    %c0_i32 = arith.constant 0 : i32
    %c0_i32_0 = arith.constant 0 : i32
    %c0_i32_1 = arith.constant 0 : i32
    return %c0_i32, %c0_i32_0 : i32, i32
  }
  func.func @transform_3(%arg0: i32) -> (i32, i32) {
    %c0_i32 = arith.constant 0 : i32
    %c0_i32_0 = arith.constant 0 : i32
    %c0_i32_1 = arith.constant 0 : i32
    return %c0_i32, %c0_i32_0 : i32, i32
  }
  func.func @transform_4(%arg0: i32) -> (i32, i32) {
    %c0_i32 = arith.constant 0 : i32
    %c0_i32_0 = arith.constant 0 : i32
    %c0_i32_1 = arith.constant 0 : i32
    return %c0_i32, %c0_i32_0 : i32, i32
  }
  func.func @transform_5(%arg0: i32) -> (i32, i32) {
    %c0_i32 = arith.constant 0 : i32
    %c0_i32_0 = arith.constant 0 : i32
    %c0_i32_1 = arith.constant 0 : i32
    return %c0_i32, %c0_i32_0 : i32, i32
  }
  func.func @transform_6(%arg0: i32) -> (i32, i32) {
    %c0_i32 = arith.constant 0 : i32
    %c0_i32_0 = arith.constant 0 : i32
    %c0_i32_1 = arith.constant 0 : i32
    return %c0_i32, %c0_i32_0 : i32, i32
  }
  func.func @transform_7(%arg0: i32) -> (i32, i32, i32) {
    %c0_i32 = arith.constant 0 : i32
    %c0_i32_0 = arith.constant 0 : i32
    %c0_i32_1 = arith.constant 0 : i32
    return %arg0, %c0_i32, %c0_i32_0 : i32, i32, i32
  }
}

</mosaic_0001>

<bundles_post_ra>
// kernel: tpu_custom_call.1
= control target key start
LH: loop header
LB: loop body
LE: loop exit
PB: predicated region body
PF: predicated region fallthrough
CT: control target
= control target key end

     0   :  { %12 = vsyncpa [#allocation5], 0  ;;  %s1324_s0 = inlined_call_operand.hbm [shape: f32[2,4,256], index: 0, kind: input, shape index: {}]   ;;  %s1325_s1 = inlined_call_operand.vmem [shape: f32[4,28], index: 1, kind: input, shape index: {}]   ;;  %s1326_s2 = inlined_call_operand.vmem [shape: f32[4,1], index: 2, kind: input, shape index: {}]   ;;  %s1327_s3 = inlined_call_operand.vmem [shape: f32[4,1], index: 3, kind: input, shape index: {}]   ;;  %s1328_s4 = inlined_call_operand.vmem [shape: f32[4,28], index: 4, kind: input, shape index: {}]   ;;  %s1329_s5 = inlined_call_operand.vmem [shape: f32[4,1], index: 5, kind: input, shape index: {}]   ;;  %s1330_s6 = inlined_call_operand.vmem [shape: f32[4,1], index: 6, kind: input, shape index: {}]   ;;  %s1331_s7 = inlined_call_operand.hbm [shape: f32[2,4,256], index: 7, kind: output, shape index: {}]  }
   0x1   :  { %14 = vsyncpa [#allocation5 + $0x1], 0 }
   0x2   :  { %15 = vsyncpa [#allocation6], 0 }
   0x3   :  { %17 = vsyncpa [#allocation6 + $0x1], 0  ;;  %s1071_s24 = smov 0   ;;  %s1073_s25 = smov 0  }
   0x4   :  { %s1075_s26 = smov 0   ;;  %s1077_s27 = smov 0  }
   0x5 LB: > { %s1092_s28 = sadd.s32 4294967295, %s1021_s27   ;;  %s794_s29 = sadd.s32 4294967294, %s1021_s27   ;;  %s1021_s27 = sphi %s1077_s27, %s1345_s27   ;;  %s1017_s26 = sphi %s1075_s26, %s1344_s26   ;;  %s1013_s25 = sphi %s1073_s25, %s1343_s25   ;;  %s1009_s24 = sphi %s1071_s24, %s1342_s24  }
   0x6   : > { %s1096_s30 = sadd.s32 1, %s1021_s27   ;;  %s30_s8 = sadd.s32 1, %s1017_s26 }
   0x7   : > { %s27_s9 = ssub.s32 %s1021_s27, %s1096_s30  ;;  %p37_p0 = scmp.ne.s32.totalorder %s1017_s26, %s1013_s25 }
   0x8   : > { %p28_p1 = scmp.eq.s32.totalorder %s27_s9, 0  ;;  %p38_p2 = scmp.eq.s32.totalorder %s1021_s27, 0 }
   0x9   : > { %p43_p3 = scmp.ne.s32.totalorder %s1013_s25, %s1009_s24  ;;  %p44_p4 = scmp.eq.s32.totalorder %s1092_s28, 0 }
   0xa   : > { %s1108_s10 = scalar_select %p28_p1, %s1017_s26, %s30_s8  }
   0xb   : > { %p1110_p5 = por %p38_p2, %p37_p0  ;;  %p1114_p6 = por %p44_p4, %p43_p3 }
   0xc   : > { %1332 = sst [smem:[#allocation10_spill]] %s1108_s10  ;;  %p193_p7 = scmp.eq.s32.totalorder %s1092_s28, 1 }
   0xd   : > { %p199_p8 = scmp.eq.s32.totalorder %s794_s29, 1  ;;  %p830_p10 = scmp.lt.s32.totalorder %s1021_s27, 2 }
   0xe   : > { %p1121_p11 = por %p193_p7, %p37_p0  ;;  %s237_s15 = sand.u32 1, %s1017_s26  }
   0xf   : > { %p1125_p12 = por %p199_p8, %p43_p3  ;;  %s816_s16 = sshll.u32 %s1021_s27, 3 }
  0x10   : > { %s797_s17 = sshll.u32 %s237_s15, 3  ;;  %s246_s20 = scalar_lea.hbm %s1324_s0, %s816_s16 }
  0x11   : > { %s248_s21 = sshll.u32 %s246_s20, 4  ;;  %s241_s22 = scalar_lea.vmem [#allocation4], %s797_s17  ;;  %s249_s21 = int_to_ptr.hbm [resolvable:$true] %s248_s21 }
  0x12   : > { %s250_s23 = sshll.u32 %s241_s22, 4  ;;  %p1136_p13 = pnand %p830_p10, %p1110_p5  ;;  %s251_s23 = int_to_ptr.vmem [resolvable:$true] %s250_s23 }
  0x13   : > { %p800_p0 = scmp.ge.s32.totalorder %s1021_s27, 1  ;;  %p255_p1 = scmp.lt.s32.totalorder %s1021_s27, 3 }
  0x14   : > { %s238_s8 = scalar_lea.sflag [#allocation5], %s237_s15  ;;  %s925_s9 = sshra.s32 %s249_s21, 4  ;;  %s926_s9 = int_to_ptr.hbm [resolvable:$true] %s925_s9 }
  0x15   : > { %s927_s10 = scalar_lea.hbm %s926_s9, 8  ;;  %p929_p3 = pneg %p1136_p13 }
  0x16   : > { %p928_p2 = scmp.ne.s32.totalorder %s926_s9, %s927_s10  ;;  %s932_s11 = scalar_lea.hbm %s1324_s0, 16 }
  0x17   : > { %p933_p5 = scmp.lt.s32.totalorder %s926_s9, %s1324_s0  ;;  %p934_p8 = scmp.lt.s32.totalorder %s932_s11, %s927_s10 }
  0x18   : > { %p930_p4 = pnand %p929_p3, %p928_p2 }
  0x19   : > { %p935_p10 = por %p934_p8, %p933_p5 }
  0x1a   : > { %p931_p7 = pneg %p930_p4 }
  0x1c   : > { %p936_p9 = pnand %p935_p10, %p931_p7 }
  0x1e   : > { %939 = shalt.err (!%p936_p9)
}
  0x1f   : > { %825 = dma.hbm_to_vmem [thread:$0]  (!%p1136_p13), %s249_s21, 128, %s251_s23, %s238_s8  }
  0x20   : > { %p256_p2 = pnand %p800_p0, %p255_p1 }
  0x21   : > { %s1157_s15 = sand.u32 (!%p256_p2), 1, %s1013_s25  }
  0x22   : > { %259 = sbr.rel (%p256_p2) target bundleno = 941 (0x3ad), region = 48  ;;  %s801_s10 = sshll.u32 (!%p256_p2), %s1157_s15, 3 }
  0x23   : > { %s262_s20 = scalar_lea.sflag (!%p256_p2), [#allocation5], %s1157_s15  ;;  %s265_s22 = scalar_lea.vmem (!%p256_p2), [#allocation4], %s801_s10 }
  0x27   : > { %1000 = dma.done.wait (%p1114_p6), %s262_s20, 128  }
  0x28   : > { %1002 = vsyncadd (%p1114_p6), %s262_s20, 4294967168  ;;  %vm297_vm0 = vcmask 388096   ;;  %vm299_vm1 = vcmask 781696   ;;  %v1023_v0 = vmov 0.0   ;;  %v1169_v1 = vld [vmem:[%s265_s22] sm:$0xff]  ;;  %s1024_s21 = smov 48  }
  0x29   : > { %298 = vst.msk [vmem:[#allocation2] sm:$0xf] %vm297_vm0, %v1023_v0  ;;  %305 = vrot.lane.b32.xlu0 %v1169_v1, %s1024_s21  ;;  %vm312_vm2 = vcmask 1043840   ;;  %vm313_vm3 = vcmask 1047556   ;;  %vm308_vm4 = vcmask 392192   ;;  %s1025_s12 = smov 112  }
  0x2a   : > { %300 = vst.msk [vmem:[#allocation2 + $0x8] sm:$0xf] %vm299_vm1, %v1023_v0  ;;  %vm1173_vm5 = vmor %vm313_vm3, %vm312_vm2  ;;  %s1026_s23 = smov 96   ;;  %s1027_s29 = smov 80   ;;  %v492_v36 = vld [vmem:[%s1327_s3] sm:$0xf] }
  0x2b   : > { %301 = vst.msk [vmem:[#allocation3] sm:$0xf] %vm297_vm0, %v1023_v0  ;;  %s1028_s8 = smov 64   ;;  %s1029_s9 = smov 32   ;;  %v484_v37 = vld [vmem:[%s1326_s2] sm:$0xf] }
  0x2c   : > { %302 = vst.msk [vmem:[#allocation3 + $0x8] sm:$0xf] %vm299_vm1, %v1023_v0  ;;  %v1030_v38 = vmov 0   ;;  %vm425_vm6 = vcmask 261120   ;;  %vm391_vm7 = vcmask 523264   ;;  %vm339_vm8 = vcmask 916480  }
  0x2d   : > { %898 = vset.pattern.permute.xlu0 %v1030_v38  ;;  %897 = vset.pattern.permute.xlu2 %v1030_v38  ;;  %vm374_vm9 = vcmask 654336   ;;  %vm356_vm10 = vcmask 785408   ;;  %vm428_vm11 = vcmask 1043456   ;;  %vm436_vm12 = vcmask 228352   ;;  %s296_s18 = scalar_lea.vmem [#allocation7], %s801_s10  ;;  %s975_s10 = scalar_lea.hbm %s1331_s7, 16 }
  0x2e   : > { %924 = vset.pattern.permute.xlu1 %v1030_v38  ;;  %s721_s19 = sshll.u32 %s296_s18, 4  ;;  %s722_s19 = int_to_ptr.vmem [resolvable:$true] %s721_s19 }
  0x9b   : > { %v306_v2 = vpop.permute.xlu0 %305 }
  0x9c   : > { %v307_v4 = vrot.slane %v306_v2, 4 }
  0x9e   : > { %v309_v5 = vsel %vm308_vm4, %v307_v4, %v306_v2  ;;  %316 = vst.msk [vmem:[#allocation2 + $0x8] sm:$0xf] %vm297_vm0, %v307_v4 }
  0x9f   : > { %315 = vst.msk [vmem:[#allocation2] sm:$0xff] %vm1173_vm5, %v309_v5 }
  0xa5   : > { %v318_v6 = vld [vmem:[#allocation2 + $0x8] sm:$0xf] }
  0xa6   : > { %v317_v7 = vld [vmem:[#allocation2] sm:$0xff]  ;;  %329 = vst [vmem:[#allocation1 + $0x11] ss:$2 sm:$0xff] %v318_v6 }
  0xa7   : > { %320 = vst [vmem:[#allocation1] ss:$2 sm:$0xff] %v317_v7 }
  0xad   : > { %v332_v8 = vld.sshfl [vmem:[#allocation1 + $0x10] sm:$0xff pattern:$0x75316420] }
  0xae   : > { %v1181_v9 = vld.sshfl [vmem:[#allocation1] sm:$0xff pattern:$0x75316420]  ;;  %v1183_v10 = vld.sshfl [vmem:[#allocation1 + $0x8] sm:$0xff pattern:$0x75316420] }
  0xaf   : > { %327 = vst [vmem:[#allocation1 + $0x1] ss:$2 sm:$0xff] %v317_v7 }
  0xb0   : > { %346 = vst [vmem:[#allocation1 + $0x10] ss:$2 sm:$0xff] %v318_v6 }
  0xb6   : > { %v330_v11 = vld.sshfl [vmem:[#allocation1] sm:$0xff pattern:$0x75316420]  ;;  %v331_v12 = vld.sshfl [vmem:[#allocation1 + $0x8] sm:$0xff pattern:$0x75316420] }
  0xb7   : > { %344 = vst [vmem:[#allocation1] ss:$2 sm:$0xff] %v317_v7  ;;  %v872_v13 = vpack.i.bf16 %v332_v8, %v331_v12  ;;  %v349_v14 = vld.sshfl [vmem:[#allocation1 + $0x10] sm:$0xff pattern:$0x75316420] }
  0xb8   : > { %364 = vst [vmem:[#allocation1 + $0x11] ss:$2 sm:$0xff] %v318_v6  ;;  %v435_v8 = vld [vmem:[%s1325_s1] sm:$0xf] }
  0xb9   : > { %873 = vrot.lane.b32.xlu1 %v872_v13, %s1025_s12 }
  0xbe   : > { %v347_v15 = vld.sshfl [vmem:[#allocation1] sm:$0xff pattern:$0x75316420]  ;;  %v348_v16 = vld.sshfl [vmem:[#allocation1 + $0x8] sm:$0xff pattern:$0x75316420] }
  0xbf   : > { %v877_v17 = vpack.i.bf16 %v349_v14, %v348_v16  ;;  %362 = vst [vmem:[#allocation1 + $0x1] ss:$2 sm:$0xff] %v317_v7  ;;  %v367_v18 = vld.sshfl [vmem:[#allocation1 + $0x10] sm:$0xff pattern:$0x75316420] }
  0xc0   : > { %381 = vst [vmem:[#allocation1 + $0x10] ss:$2 sm:$0xff] %v318_v6 }
  0xc1   : > { %878 = vrot.lane.b32.xlu0 %v877_v17, %s1026_s23 }
  0xc6   : > { %v366_v19 = vld.sshfl [vmem:[#allocation1 + $0x8] sm:$0xff pattern:$0x75316420]  ;;  %v365_v20 = vld.sshfl [vmem:[#allocation1] sm:$0xff pattern:$0x75316420] }
  0xc7   : > { %v882_v21 = vpack.i.bf16 %v367_v18, %v366_v19  ;;  %379 = vst [vmem:[#allocation1] ss:$2 sm:$0xff] %v317_v7  ;;  %v384_v22 = vld.sshfl [vmem:[#allocation1 + $0x10] sm:$0xff pattern:$0x75316420] }
  0xc8   : > { %399 = vst [vmem:[#allocation1 + $0x11] ss:$2 sm:$0xff] %v318_v6 }
  0xc9   : > { %883 = vrot.lane.b32.xlu1 %v882_v21, %s1027_s29 }
  0xce   : > { %v382_v23 = vld.sshfl [vmem:[#allocation1] sm:$0xff pattern:$0x75316420]  ;;  %v383_v24 = vld.sshfl [vmem:[#allocation1 + $0x8] sm:$0xff pattern:$0x75316420] }
  0xcf   : > { %385 = vrot.lane.b32.xlu2 %v382_v23, %s1028_s8  ;;  %v887_v25 = vpack.i.bf16 %v384_v22, %v383_v24  ;;  %397 = vst [vmem:[#allocation1 + $0x1] ss:$2 sm:$0xff] %v317_v7  ;;  %v402_v26 = vld.sshfl [vmem:[#allocation1 + $0x10] sm:$0xff pattern:$0x75316420] }
  0xd0   : > { %415 = vst [vmem:[#allocation1 + $0x10] ss:$2 sm:$0xff] %v318_v6 }
  0xd1   : > { %888 = vrot.lane.b32.xlu1 %v887_v25, %s1028_s8 }
  0xd6   : > { %v400_v27 = vld.sshfl [vmem:[#allocation1] sm:$0xff pattern:$0x75316420]  ;;  %v401_v28 = vld.sshfl [vmem:[#allocation1 + $0x8] sm:$0xff pattern:$0x75316420] }
  0xd7   : > { %403 = vrot.lane.b32.xlu0 %v400_v27, %s1024_s21  ;;  %v892_v29 = vpack.i.bf16 %v402_v26, %v401_v28  ;;  %413 = vst [vmem:[#allocation1] ss:$2 sm:$0xff] %v317_v7  ;;  %v418_v30 = vld.sshfl [vmem:[#allocation1 + $0x10] sm:$0xff pattern:$0x75316420] }
  0xd9   : > { %423 = vrot.lane.b32.xlu1 %v418_v30, %s1029_s9  ;;  %893 = vrot.lane.b32.xlu2 %v892_v29, %s1024_s21 }
  0xde   : > { %v417_v31 = vld.sshfl [vmem:[#allocation1 + $0x8] sm:$0xff pattern:$0x75316420]  ;;  %v416_v32 = vld.sshfl [vmem:[#allocation1] sm:$0xff pattern:$0x75316420] }
  0xdf   : > { %421 = vrot.lane.b32.xlu0 %v417_v31, %s1029_s9 }
  0xe1   : > { %333 = vrot.lane.b32.xlu1 %v330_v11, %s1025_s12  ;;  %419 = vrot.lane.b32.xlu2 %v416_v32, %s1029_s9 }
  0xe7   : > { %368 = vrot.lane.b32.xlu0 %v365_v20, %s1027_s29 }
  0xe9   : > { %350 = vrot.lane.b32.xlu2 %v347_v15, %s1026_s23 }
  0xef   : > { %495 = vperm.xlu0 %898, %v492_v36  }
  0xf1   : > { %487 = vperm.xlu2 %897, %v484_v37  }
 0x129   : > { %v386_v34 = vpop.permute.xlu2 %385 }
 0x12b   : > { %v874_v33 = vpop.permute.xlu1 %873 }
 0x12c   : > { %v876_v51 = vunpack.i.h.bf16 %v874_v33  ;;  %v875_v52 = vunpack.i.l.bf16 %v874_v33 }
 0x12e   : > { %v341_v4 = vsel %vm339_vm8, %v875_v52, %v876_v51 }
 0x12f   : > { %v430_v11 = vsel %vm428_vm11, %v1183_v10, %v341_v4 }
 0x133   : > { %v879_v39 = vpop.permute.xlu0 %878  ;;  %v894_v40 = vpop.permute.xlu2 %893 }
 0x134   : > { %v896_v47 = vunpack.i.h.bf16 %v894_v40  ;;  %v895_v48 = vunpack.i.l.bf16 %v894_v40  ;;  %v881_v53 = vunpack.i.h.bf16 %v879_v39  ;;  %v880_v54 = vunpack.i.l.bf16 %v879_v39 }
 0x136   : > { %v410_v61 = vsel %vm308_vm4, %v895_v48, %v896_v47  ;;  %v358_v2 = vsel %vm356_vm10, %v880_v54, %v881_v53 }
 0x13b   : > { %v884_v35 = vpop.permute.xlu1 %883  ;;  %v420_v43 = vpop.permute.xlu2 %419 }
 0x13c   : > { %v886_v49 = vunpack.i.h.bf16 %v884_v35  ;;  %v885_v50 = vunpack.i.l.bf16 %v884_v35 }
 0x13e   : > { %v376_v62 = vsel %vm374_vm9, %v885_v50, %v886_v49 }
 0x13f   : > { %v432_v5 = vsel %vm428_vm11, %v358_v2, %v376_v62 }
 0x143   : > { %v889_v41 = vpop.permute.xlu1 %888  ;;  %v351_v6 = vpop.permute.xlu2 %350 }
 0x144   : > { %v891_v44 = vunpack.i.h.bf16 %v889_v41  ;;  %v890_v45 = vunpack.i.l.bf16 %v889_v41  ;;  %v357_v13 = vsel %vm356_vm10, %v351_v6, %v880_v54 }
 0x146   : > { %v393_v57 = vsel %vm391_vm7, %v890_v45, %v891_v44  ;;  %v392_v60 = vsel %vm391_vm7, %v386_v34, %v890_v45 }
 0x147   : > { %v434_v0 = vsel %vm428_vm11, %v393_v57, %v410_v61  ;;  %v682_v57 = vld [vmem:[%s1330_s6] sm:$0xf] }
 0x149   : > { %v404_v42 = vpop.permute.xlu0 %403 }
 0x14a   : > { %v409_v55 = vsel %vm308_vm4, %v404_v42, %v895_v48 }
 0x14b   : > { %v424_v46 = vpop.permute.xlu1 %423  ;;  %v433_v63 = vsel %vm428_vm11, %v392_v60, %v409_v55  ;;  %v488_v10 = vpop.permute.xlu2 %487 }
 0x151   : > { %v422_v56 = vpop.permute.xlu0 %421 }
 0x152   : > { %v426_v58 = vsel %vm425_vm6, %v420_v43, %v422_v56  ;;  %v427_v59 = vsel %vm425_vm6, %v422_v56, %v424_v46 }
 0x153   : > { %803 = vmatpush.msk.msra.mxu0 %vm428_vm11, %v426_v58  ;;  %805 = vmatpush.msk.msra.mxu1 %vm428_vm11, %v427_v59  ;;  %v334_v7 = vpop.permute.xlu1 %333 }
 0x154   : > { %v340_v14 = vsel %vm339_vm8, %v334_v7, %v875_v52 }
 0x155   : > { %457 = vmatpush.msra.mxu0 %v433_v63  ;;  %477 = vmatpush.msra.mxu1 %v434_v0  ;;  %v429_v17 = vsel %vm428_vm11, %v1181_v9, %v340_v14 }
 0x157   : > { %478 = vmatpush.msra.mxu1 %v432_v5 }
 0x159   : > { %479 = vmatpush.msra.mxu1 %v430_v11  ;;  %v369_v12 = vpop.permute.xlu0 %368 }
 0x15a   : > { %v375_v15 = vsel %vm374_vm9, %v369_v12, %v885_v50  ;;  %806 = vmatmul.msk.f32.vlgmr.msra.gmra.mxu1 %vm436_vm12, %v435_v8 }
 0x15b   : > { %v431_v16 = vsel %vm428_vm11, %v357_v13, %v375_v15 }
 0x15c   : > { %458 = vmatpush.msra.mxu0 %v431_v16 }
 0x15e   : > { %459 = vmatpush.msra.mxu0 %v429_v17 }
 0x15f   : > { %804 = vmatmul.msk.f32.vlgmr.msra.gmra.mxu0 %vm436_vm12, %v435_v8 }
 0x161   : > { %v496_v19 = vpop.permute.xlu0 %495 }
 0x1d7   : > { %v481_v18 = vpop.f32.mrf.mxu1 }
 0x1d8   : > { %v491_v20 = vmul.f32 %v488_v10, %v481_v18 }
 0x1da   : > { %v499_v21 = vadd.f32 %v496_v19, %v491_v20 }
 0x1dc   : > { %v501_v22 = vmax.f32 %v499_v21, 0.0  ;;  %v461_v23 = vpop.f32.mrf.mxu0 }
 0x1dd   : > { %v490_v24 = vmul.f32 %v488_v10, %v461_v23 }
 0x1de   : > { %v504_v25 = vrot.slane %v501_v22, 4 }
 0x1df   : > { %v498_v26 = vadd.f32 %v496_v19, %v490_v24 }
 0x1e1   : > { %v500_v27 = vmax.f32 %v498_v26, 0.0  ;;  %v626_v26 = vld [vmem:[%s1328_s4] sm:$0xf] }
 0x1e3   : > { %v505_v28 = vsel %vm428_vm11, %v500_v27, %v504_v25 }
 0x1e4   : > { %506 = vrot.lane.b32.xlu1 %v505_v28, %s1024_s21 }
 0x256   : > { %v507_v29 = vpop.permute.xlu1 %506 }
 0x257   : > { %v508_v9 = vrot.slane %v507_v29, 4 }
 0x259   : > { %v509_v30 = vsel %vm308_vm4, %v508_v9, %v507_v29  ;;  %513 = vst.msk [vmem:[#allocation3 + $0x8] sm:$0xf] %vm297_vm0, %v508_v9 }
 0x25a   : > { %512 = vst.msk [vmem:[#allocation3] sm:$0xff] %vm1173_vm5, %v509_v30 }
 0x260   : > { %v515_v31 = vld [vmem:[#allocation3 + $0x8] sm:$0xf] }
 0x261   : > { %v514_v32 = vld [vmem:[#allocation3] sm:$0xff]  ;;  %526 = vst [vmem:[#allocation1 + $0x11] ss:$2 sm:$0xff] %v515_v31 }
 0x262   : > { %517 = vst [vmem:[#allocation1] ss:$2 sm:$0xff] %v514_v32 }
 0x268   : > { %v529_v33 = vld.sshfl [vmem:[#allocation1 + $0x10] sm:$0xff pattern:$0x75316420] }
 0x269   : > { %v1237_v34 = vld.sshfl [vmem:[#allocation1] sm:$0xff pattern:$0x75316420]  ;;  %v1239_v35 = vld.sshfl [vmem:[#allocation1 + $0x8] sm:$0xff pattern:$0x75316420] }
 0x26a   : > { %524 = vst [vmem:[#allocation1 + $0x1] ss:$2 sm:$0xff] %v514_v32 }
 0x26b   : > { %542 = vst [vmem:[#allocation1 + $0x10] ss:$2 sm:$0xff] %v515_v31 }
 0x271   : > { %v527_v36 = vld.sshfl [vmem:[#allocation1] sm:$0xff pattern:$0x75316420]  ;;  %v528_v37 = vld.sshfl [vmem:[#allocation1 + $0x8] sm:$0xff pattern:$0x75316420] }
 0x272   : > { %v899_v38 = vpack.i.bf16 %v529_v33, %v528_v37  ;;  %540 = vst [vmem:[#allocation1] ss:$2 sm:$0xff] %v514_v32  ;;  %v545_v39 = vld.sshfl [vmem:[#allocation1 + $0x10] sm:$0xff pattern:$0x75316420] }
 0x273   : > { %559 = vst [vmem:[#allocation1 + $0x11] ss:$2 sm:$0xff] %v515_v31 }
 0x274   : > { %900 = vrot.lane.b32.xlu0 %v899_v38, %s1025_s12 }
 0x279   : > { %v543_v3 = vld.sshfl [vmem:[#allocation1] sm:$0xff pattern:$0x75316420]  ;;  %v544_v40 = vld.sshfl [vmem:[#allocation1 + $0x8] sm:$0xff pattern:$0x75316420] }
 0x27a   : > { %v904_v41 = vpack.i.bf16 %v545_v39, %v544_v40  ;;  %557 = vst [vmem:[#allocation1 + $0x1] ss:$2 sm:$0xff] %v514_v32  ;;  %v562_v42 = vld.sshfl [vmem:[#allocation1 + $0x10] sm:$0xff pattern:$0x75316420] }
 0x27b   : > { %575 = vst [vmem:[#allocation1 + $0x10] ss:$2 sm:$0xff] %v515_v31 }
 0x27c   : > { %905 = vrot.lane.b32.xlu2 %v904_v41, %s1026_s23 }
 0x281   : > { %v560_v43 = vld.sshfl [vmem:[#allocation1] sm:$0xff pattern:$0x75316420]  ;;  %v561_v44 = vld.sshfl [vmem:[#allocation1 + $0x8] sm:$0xff pattern:$0x75316420] }
 0x282   : > { %v909_v45 = vpack.i.bf16 %v562_v42, %v561_v44  ;;  %573 = vst [vmem:[#allocation1] ss:$2 sm:$0xff] %v514_v32  ;;  %v578_v46 = vld.sshfl [vmem:[#allocation1 + $0x10] sm:$0xff pattern:$0x75316420] }
 0x283   : > { %592 = vst [vmem:[#allocation1 + $0x11] ss:$2 sm:$0xff] %v515_v31 }
 0x284   : > { %910 = vrot.lane.b32.xlu0 %v909_v45, %s1027_s29 }
 0x289   : > { %v576_v47 = vld.sshfl [vmem:[#allocation1] sm:$0xff pattern:$0x75316420]  ;;  %v577_v48 = vld.sshfl [vmem:[#allocation1 + $0x8] sm:$0xff pattern:$0x75316420] }
 0x28a   : > { %579 = vrot.lane.b32.xlu1 %v576_v47, %s1028_s8  ;;  %v914_v49 = vpack.i.bf16 %v578_v46, %v577_v48  ;;  %590 = vst [vmem:[#allocation1 + $0x1] ss:$2 sm:$0xff] %v514_v32  ;;  %v595_v50 = vld.sshfl [vmem:[#allocation1 + $0x10] sm:$0xff pattern:$0x75316420] }
 0x28b   : > { %608 = vst [vmem:[#allocation1 + $0x10] ss:$2 sm:$0xff] %v515_v31 }
 0x28c   : > { %915 = vrot.lane.b32.xlu2 %v914_v49, %s1028_s8 }
 0x291   : > { %v594_v51 = vld.sshfl [vmem:[#allocation1 + $0x8] sm:$0xff pattern:$0x75316420]  ;;  %v593_v52 = vld.sshfl [vmem:[#allocation1] sm:$0xff pattern:$0x75316420] }
 0x292   : > { %v611_v53 = vld.sshfl [vmem:[#allocation1 + $0x10] sm:$0xff pattern:$0x75316420]  ;;  %v919_v54 = vpack.i.bf16 %v595_v50, %v594_v51  ;;  %606 = vst [vmem:[#allocation1] ss:$2 sm:$0xff] %v514_v32 }
 0x293   : > { %616 = vrot.lane.b32.xlu1 %v611_v53, %s1029_s9 }
 0x294   : > { %920 = vrot.lane.b32.xlu0 %v919_v54, %s1024_s21  ;;  %596 = vrot.lane.b32.xlu2 %v593_v52, %s1024_s21 }
 0x299   : > { %v609_v55 = vld.sshfl [vmem:[#allocation1] sm:$0xff pattern:$0x75316420]  ;;  %v610_v56 = vld.sshfl [vmem:[#allocation1 + $0x8] sm:$0xff pattern:$0x75316420] }
 0x29a   : > { %692 = vst [vmem:[#allocation1] ss:$2 sm:$0xff] %v1169_v1  ;;  %v674_v1 = vld [vmem:[%s1329_s5] sm:$0xf] }
 0x29b   : > { %612 = vrot.lane.b32.xlu1 %v609_v55, %s1029_s9 }
 0x29c   : > { %530 = vrot.lane.b32.xlu0 %v527_v36, %s1025_s12  ;;  %614 = vrot.lane.b32.xlu2 %v610_v56, %s1029_s9 }
 0x2a1   : > { %v694_v44 = vld.sshfl [vmem:[#allocation1 + $0x8] sm:$0xff pattern:$0x75316420]  ;;  %v693_v50 = vld.sshfl [vmem:[#allocation1] sm:$0xff pattern:$0x75316420] }
 0x2a3   : > { %546 = vrot.lane.b32.xlu1 %v543_v3, %s1026_s23 }
 0x2a4   : > { %563 = vrot.lane.b32.xlu2 %v560_v43, %s1027_s29  ;;  %s817_s29 = sshll.u32 %s1092_s28, 3  ;;  %s708_s28 = scalar_lea.sflag [#allocation6], %s1157_s15 }
 0x2a5   : > { %s719_s11 = scalar_lea.hbm %s1331_s7, %s817_s29 }
 0x2a6   : > { %s723_s20 = sshll.u32 %s719_s11, 4  ;;  %s724_s20 = int_to_ptr.hbm [resolvable:$true] %s723_s20 }
 0x2a7   : > { %s969_s22 = sshra.s32 %s724_s20, 4  ;;  %s970_s22 = int_to_ptr.hbm [resolvable:$true] %s969_s22 }
 0x2a8   : > { %s971_s8 = scalar_lea.hbm %s970_s22, 8  ;;  %p976_p0 = scmp.lt.s32.totalorder %s970_s22, %s1331_s7 }
 0x2a9   : > { %p972_p6 = scmp.ne.s32.totalorder %s970_s22, %s971_s8  ;;  %p977_p1 = scmp.lt.s32.totalorder %s975_s10, %s971_s8 }
 0x2ab   : > { %677 = vperm.xlu1 %924, %v674_v1   ;;  %p973_p9 = pnand %p972_p6, %p1121_p11  ;;  %p978_p3 = por %p977_p1, %p976_p0 }
 0x2ac   : > { %685 = vperm.xlu2 %897, %v682_v57  }
 0x2ad   : > { %p974_p13 = pneg %p973_p9 }
 0x2af   : > { %p979_p4 = pnand %p978_p3, %p974_p13 }
 0x2d6   : > { %v906_v58 = vpop.permute.xlu2 %905 }
 0x2d7   : > { %v908_v8 = vunpack.i.h.bf16 %v906_v58  ;;  %v907_v11 = vunpack.i.l.bf16 %v906_v58 }
 0x2d9   : > { %v553_v21 = vsel %vm356_vm10, %v907_v11, %v908_v8 }
 0x2e6   : > { %v916_v59 = vpop.permute.xlu2 %915  ;;  %v901_v60 = vpop.permute.xlu0 %900 }
 0x2e7   : > { %v918_v0 = vunpack.i.h.bf16 %v916_v59  ;;  %v917_v2 = vunpack.i.l.bf16 %v916_v59  ;;  %v903_v14 = vunpack.i.h.bf16 %v901_v60  ;;  %v902_v15 = vunpack.i.l.bf16 %v901_v60 }
 0x2e9   : > { %v586_v10 = vsel %vm391_vm7, %v917_v2, %v918_v0  ;;  %v537_v22 = vsel %vm339_vm8, %v902_v15, %v903_v14 }
 0x2ea   : > { %v621_v28 = vsel %vm428_vm11, %v1239_v35, %v537_v22 }
 0x2ee   : > { %v597_v61 = vpop.permute.xlu2 %596 }
 0x2f6   : > { %v911_v63 = vpop.permute.xlu0 %910  ;;  %v615_v6 = vpop.permute.xlu2 %614 }
 0x2f7   : > { %v913_v4 = vunpack.i.h.bf16 %v911_v63  ;;  %v912_v5 = vunpack.i.l.bf16 %v911_v63 }
 0x2f9   : > { %v570_v19 = vsel %vm374_vm9, %v912_v5, %v913_v4 }
 0x2fa   : > { %v623_v23 = vsel %vm428_vm11, %v553_v21, %v570_v19 }
 0x2fc   : > { %v580_v62 = vpop.permute.xlu1 %579 }
 0x2fd   : > { %v585_v29 = vsel %vm391_vm7, %v580_v62, %v917_v2 }
 0x2fe   : > { %v564_v30 = vpop.permute.xlu2 %563 }
 0x2ff   : > { %v569_v33 = vsel %vm374_vm9, %v564_v30, %v912_v5 }
 0x305   : > { %v617_v7 = vpop.permute.xlu1 %616 }
 0x306   : > { %v921_v12 = vpop.permute.xlu0 %920  ;;  %v619_v13 = vsel %vm425_vm6, %v615_v6, %v617_v7  ;;  %v686_v41 = vpop.permute.xlu2 %685 }
 0x307   : > { %v923_v16 = vunpack.i.h.bf16 %v921_v12  ;;  %v922_v17 = vunpack.i.l.bf16 %v921_v12  ;;  %809 = vmatpush.msk.msra.mxu3 %vm428_vm11, %v619_v13 }
 0x309   : > { %v603_v18 = vsel %vm308_vm4, %v922_v17, %v923_v16  ;;  %v602_v25 = vsel %vm308_vm4, %v597_v61, %v922_v17 }
 0x30a   : > { %v625_v20 = vsel %vm428_vm11, %v586_v10, %v603_v18  ;;  %v624_v9 = vsel %vm428_vm11, %v585_v29, %v602_v25 }
 0x30b   : > { %667 = vmatpush.msra.mxu3 %v625_v20 }
 0x30d   : > { %v613_v24 = vpop.permute.xlu1 %612  ;;  %668 = vmatpush.msra.mxu3 %v623_v23 }
 0x30e   : > { %v618_v27 = vsel %vm425_vm6, %v613_v24, %v615_v6  ;;  %v531_v31 = vpop.permute.xlu0 %530 }
 0x30f   : > { %807 = vmatpush.msk.msra.mxu2 %vm428_vm11, %v618_v27  ;;  %669 = vmatpush.msra.mxu3 %v621_v28  ;;  %v536_v36 = vsel %vm339_vm8, %v531_v31, %v902_v15 }
 0x310   : > { %810 = vmatmul.msk.f32.vlgmr.msra.gmra.mxu3 %vm436_vm12, %v626_v26  ;;  %v620_v38 = vsel %vm428_vm11, %v1237_v34, %v536_v36 }
 0x311   : > { %647 = vmatpush.msra.mxu2 %v624_v9 }
 0x315   : > { %v547_v32 = vpop.permute.xlu1 %546 }
 0x316   : > { %v552_v37 = vsel %vm356_vm10, %v547_v32, %v907_v11 }
 0x317   : > { %v622_v35 = vsel %vm428_vm11, %v552_v37, %v569_v33 }
 0x318   : > { %648 = vmatpush.msra.mxu2 %v622_v35 }
 0x31a   : > { %649 = vmatpush.msra.mxu2 %v620_v38 }
 0x31b   : > { %808 = vmatmul.msk.f32.vlgmr.msra.gmra.mxu2 %vm436_vm12, %v626_v26 }
 0x31d   : > { %v678_v39 = vpop.permute.xlu1 %677 }
 0x393   : > { %v671_v3 = vpop.f32.mrf.mxu3 }
 0x394   : > { %v681_v40 = vmul.f32 %v678_v39, %v671_v3 }
 0x396   : > { %v689_v42 = vadd.f32 %v686_v41, %v681_v40 }
 0x398   : > { %v691_v43 = vmax.f32 %v689_v42, 0.0 }
 0x39a   : > { %v698_v46 = vadd.f32 %v694_v44, %v691_v43 }
 0x39c   : > { %v700_v34 = vmax.f32 %v698_v46, 0.0 }
 0x39e   : > { %v651_v45 = vpop.f32.mrf.mxu2  ;;  %v703_v52 = vrot.slane %v700_v34, 4 }
 0x39f   : > { %v680_v47 = vmul.f32 %v678_v39, %v651_v45 }
 0x3a1   : > { %v688_v48 = vadd.f32 %v686_v41, %v680_v47 }
 0x3a3   : > { %v690_v49 = vmax.f32 %v688_v48, 0.0 }
 0x3a5   : > { %v697_v51 = vadd.f32 %v693_v50, %v690_v49 }
 0x3a7   : > { %v699_v53 = vmax.f32 %v697_v51, 0.0 }
 0x3a9   : > { %v704_v54 = vsel %vm428_vm11, %v699_v53, %v703_v52 }
 0x3aa   : > { %706 = vst [vmem:[%s296_s18] sm:$0xff] %v704_v54 }
 0x3ab   : > { %982 = shalt.err (!%p979_p4)
}
 0x3ac   : > { %820 = dma.vmem_to_hbm [thread:$0]  (%p1121_p11), %s722_s19, 128, %s724_s20, %s708_s28  }
 0x3ad PF: > { %s735_s15 = sand.u32 1, %s1009_s24   ;;  %p1340_p7 = scmp.ge.s32.totalorder %s1021_s27, 2 }
 0x3ae   : > { %s736_s29 = scalar_lea.sflag [#allocation6], %s735_s15 }
 0x3af   : > { %p827_p5 = pnand %p1340_p7, %p1125_p12 }
 0x3b1   : > { %p828_p8 = pneg %p827_p5 }
 0x3b3   : > { %1004 = dma.done.wait (%p828_p8), %s736_s29, 128  }
 0x3b4   : > { %1006 = vsyncadd (%p828_p8), %s736_s29, 4294967168  ;;  %s1341_s9 = sld [smem:[#allocation10_spill]]  ;;  %p20_p10 = scmp.ge.s32.totalorder %s1096_s30, 4  }
 0x3b5   : > { %s1342_s24 = smov %s1013_s25  ;;  %s1343_s25 = smov %s1017_s26 }
 0x3b6   : > { %s1345_s27 = smov %s1096_s30  ;;  %22 = sbr.rel (!%p20_p10) target bundleno = 5 (0x5), region = 111 }
 0x3ba   : > { %s1344_s26 = smov %s1341_s9 }
 0x3bb   :  { %742 = vsyncpa [#allocation5], 1 }
 0x3bc   :  { %744 = vsyncpa [#allocation5 + $0x1], 1 }
 0x3bd   :  { %745 = vsyncpa [#allocation6], 1 }
 0x3be   :  { %747 = vsyncpa [#allocation6 + $0x1], 1 }

</bundles_post_ra>
